<compile_context>
chip_gen: v7x
topology: tpu7x:2x2x1
jax: 0.10.0
libtpu: 0.0.40
codegen_flags: <defaults>
</compile_context>

<pallas_src>
import jax
import jax.numpy as jnp
import numpy as np
from jax.experimental import pallas as pl
from jax.experimental.pallas import tpu as pltpu

N_FILTER = 32            # implied by conv2(in_channels=32) / conv3(in_channels=64)
SE_CH = N_FILTER * 3     # 96
SE_HID = SE_CH // 2      # reduction=2 -> 48


def dense_block_kernel(x_ref, w1_ref, b1_ref, w2_ref, b2_ref, w3_ref, b3_ref,
                       fc1_ref, fc2_ref, out_ref, c3_ref):
    # x_ref:   (C_in, tb*L) bf16   -- batch folded into the lane / N axis
    # w1_ref:  (32, C_in) bf16     w2_ref: (32, 32) bf16   w3_ref: (32, 64) bf16
    # b*_ref:  (32, 1) f32
    # fc1_ref: (96, 48) f32  == nn.Linear(96,48).weight.T   ([in, out])
    # fc2_ref: (96, 48) f32  == nn.Linear(48,96).weight     ([out, in])
    # out_ref: (tb, 96, L) out_dtype
    # c3_ref:  (96, tb*L) f32 VMEM scratch
    tb, _, L = out_ref.shape
    x = x_ref[...]                                              # (C_in, tb*L) bf16

    # conv1..conv3 (pointwise) run ONCE per grid step on the wide N = tb*L slab;
    # bf16 operands, f32 accumulation.  dropout(p=0.0) == identity.
    h1 = jnp.maximum(
        jnp.dot(w1_ref[...], x, preferred_element_type=jnp.float32) + b1_ref[...], 0.0)
    h1b = h1.astype(jnp.bfloat16)
    h2 = jnp.maximum(
        jnp.dot(w2_ref[...], h1b, preferred_element_type=jnp.float32) + b2_ref[...], 0.0)
    h2b = h2.astype(jnp.bfloat16)
    # c2_dense = relu(cat[h1, h2]); the outer relu is a no-op (inputs >= 0) and
    # the concat is a sublane stack at a 32-row boundary -> single K=64 MXU push.
    c2b = jnp.concatenate([h1b, h2b], axis=0)                   # (64, tb*L) bf16
    h3 = jnp.maximum(
        jnp.dot(w3_ref[...], c2b, preferred_element_type=jnp.float32) + b3_ref[...], 0.0)

    # c3_dense = relu(cat[h1, h2, h3]) (relu again a no-op); stage it in VMEM so
    # the f32 slabs are no longer vreg-live across the per-batch SE loop.
    c3_ref[0:N_FILTER, :] = h1
    c3_ref[N_FILTER:2 * N_FILTER, :] = h2
    c3_ref[2 * N_FILTER:, :] = h3

    fc1_t = fc1_ref[...]
    fc2_w = fc2_ref[...]

    # SELayer per batch element: AdaptiveAvgPool1d(1) over L, Linear(96->48,
    # bias=False), ReLU, Linear(48->96, bias=False), Sigmoid, channel scale.
    # Tiny matvecs done as broadcast-mul + reduce (VPU/XLU) to avoid 1-wide MXU
    # matmuls / (96,1) transposes.  Static unroll; tb is capped small.
    for b in range(tb):
        c3b = c3_ref[:, b * L:(b + 1) * L]                               # (96, L) f32
        y = jnp.mean(c3b, axis=1, keepdims=True)                         # (96, 1)
        z = jnp.maximum(jnp.sum(fc1_t * y, axis=0, keepdims=True), 0.0)  # (1, 48)
        s = jax.nn.sigmoid(jnp.sum(fc2_w * z, axis=1, keepdims=True))    # (96, 1)
        out_ref[b] = (c3b * s).astype(out_ref.dtype)                     # lane-dense store


def _pick_batch_tile(B, C_in, L, out_bytes):
    """Batch elements per grid step.

    Amortizes the ~0.35us per-grid-step overhead by making the per-step block
    as wide as is safe: double-buffered in/out blocks + the single c3 scratch
    stay well below every generation's scoped-VMEM ceiling (16 MiB default on
    v5e, 32 MiB on v6e/v7x; we set vmem_limit_bytes=32 MiB explicitly).  We
    prefer batch tiles whose lane width tb*L is a multiple of 128 so the
    in-kernel L-slices and the x block stay lane-aligned.
    """
    per_b = (2 * C_in * L * 2            # double-buffered bf16 x block
             + 2 * SE_CH * L * out_bytes  # double-buffered output block
             + SE_CH * L * 4)             # f32 c3 scratch
    budget = 8 << 20
    best = 1
    for cand in range(1, B + 1):
        if B % cand:
            continue
        if cand > 8:                       # keep the unrolled SE loop short
            break
        if cand * per_b > budget:
            break
        if cand != B and (cand * L) % 128 != 0:
            continue                       # keep blocks lane-aligned when possible
        best = cand
    return best


def dense_block(x_ncl, params, batch_tile=None, out_dtype=jnp.bfloat16):
    """x_ncl: (B, C_in, L) float32 (PyTorch NCL).  Returns (B, 96, L) out_dtype.

    out_dtype defaults to bf16 (halves the dominant HBM store stream); pass
    jnp.float32 for bit-closer parity with the PyTorch module.
    """
    B, C_in, L = x_ncl.shape
    w1, b1, w2, b2, w3, b3, fc1_t, fc2_w = params

    out_bytes = np.dtype(out_dtype).itemsize
    tb = batch_tile if batch_tile is not None else _pick_batch_tile(B, C_in, L, out_bytes)
    assert B % tb == 0, (B, tb)

    # One cheap bf16 transpose of the (tiny) input folds batch into the matmul
    # N / lane axis; bf16 operands halve weight/activation DMA bytes (f32
    # accumulation happens in-kernel).
    x_flat = jnp.transpose(x_ncl, (1, 0, 2)).reshape(C_in, B * L).astype(jnp.bfloat16)
    w1b = w1.astype(jnp.bfloat16)
    w2b = w2.astype(jnp.bfloat16)
    w3b = w3.astype(jnp.bfloat16)

    def full(arr):
        nd = arr.ndim
        return pl.BlockSpec(arr.shape, lambda i, _nd=nd: (0,) * _nd)

    out = pl.pallas_call(
        dense_block_kernel,
        out_shape=jax.ShapeDtypeStruct((B, SE_CH, L), out_dtype),
        grid=(B // tb,),
        in_specs=[
            pl.BlockSpec((C_in, tb * L), lambda i: (0, i)),
            full(w1b), full(b1), full(w2b), full(b2),
            full(w3b), full(b3), full(fc1_t), full(fc2_w),
        ],
        out_specs=pl.BlockSpec((tb, SE_CH, L), lambda i: (i, 0, 0)),
        scratch_shapes=[pltpu.VMEM((SE_CH, tb * L), jnp.float32)],
        compiler_params=pltpu.CompilerParams(
            dimension_semantics=("parallel",),
            vmem_limit_bytes=32 << 20),
    )(x_flat, w1b, b1, w2b, b2, w3b, b3, fc1_t, fc2_w)
    return out


def init_params(key, in_channels):
    """Parameters in PyTorch-native layouts (Conv1d weight (C_out, C_in, 1)
    squeezed to (C_out, C_in); SE Linear weights as fc1.weight.T / fc2.weight)."""
    ks = jax.random.split(key, 8)
    s = 0.1
    w1 = s * jax.random.normal(ks[0], (N_FILTER, in_channels), jnp.float32)
    b1 = s * jax.random.normal(ks[1], (N_FILTER, 1), jnp.float32)
    w2 = s * jax.random.normal(ks[2], (N_FILTER, N_FILTER), jnp.float32)
    b2 = s * jax.random.normal(ks[3], (N_FILTER, 1), jnp.float32)
    w3 = s * jax.random.normal(ks[4], (N_FILTER, 2 * N_FILTER), jnp.float32)  # conv3.weight
    b3 = s * jax.random.normal(ks[5], (N_FILTER, 1), jnp.float32)
    fc1_t = s * jax.random.normal(ks[6], (SE_CH, SE_HID), jnp.float32)        # Linear(96,48).weight.T
    fc2_w = s * jax.random.normal(ks[7], (SE_CH, SE_HID), jnp.float32)        # Linear(48,96).weight
    return (w1, b1, w2, b2, w3, b3, fc1_t, fc2_w)


def dense_block_ref(x_ncl, params):
    """Pure-JAX reference mirroring the PyTorch forward in NCL layout, using the
    same bf16 matmul operands / f32 accumulation as the kernel."""
    w1, b1, w2, b2, w3, b3, fc1_t, fc2_w = params
    bf = lambda a: a.astype(jnp.bfloat16)
    dot = lambda a, b_: jnp.dot(a, b_, preferred_element_type=jnp.float32)
    w1b, w2b, w3b = bf(w1), bf(w2), bf(w3)

    def one(xb):                                               # xb: (C_in, L) bf16
        h1 = jax.nn.relu(dot(w1b, xb) + b1)                    # conv1 + relu
        h2 = jax.nn.relu(dot(w2b, bf(h1)) + b2)                # conv2 + relu
        c2 = jax.nn.relu(jnp.concatenate([h1, h2], axis=0))    # relu is a no-op here
        h3 = jax.nn.relu(dot(w3b, bf(c2)) + b3)                # conv3 + relu
        c3 = jax.nn.relu(jnp.concatenate([h1, h2, h3], axis=0))
        y = jnp.mean(c3, axis=1, keepdims=True)                          # AdaptiveAvgPool1d(1)
        z = jax.nn.relu(jnp.sum(fc1_t * y, axis=0, keepdims=True))       # Linear 96->48 (no bias)
        s = jax.nn.sigmoid(jnp.sum(fc2_w * z, axis=1, keepdims=True))    # Linear 48->96 (no bias)
        return c3 * s                                                    # channel excitation

    return jax.vmap(one)(bf(x_ncl))


if __name__ == "__main__":
    key = jax.random.PRNGKey(0)
    k_x, k_p = jax.random.split(key)

    B, C_in, L = 2, 4, 128        # NCL input; L=128 keeps loads/stores lane-dense
    x = jax.random.normal(k_x, (B, C_in, L), jnp.float32)
    params = init_params(k_p, C_in)

    ref = dense_block_ref(x, params)

    # f32-output path: bit-close parity with the (bf16-matmul) reference.
    out_f32 = jax.block_until_ready(dense_block(x, params, out_dtype=jnp.float32))
    assert out_f32.shape == (B, SE_CH, L), out_f32.shape
    np.testing.assert_allclose(np.asarray(out_f32), np.asarray(ref), rtol=1e-4, atol=1e-5)

    # Default bf16-output path (halves the dominant HBM store stream).
    out_bf16 = jax.block_until_ready(dense_block(x, params))
    assert out_bf16.dtype == jnp.bfloat16
    np.testing.assert_allclose(np.asarray(out_bf16.astype(jnp.float32)), np.asarray(ref),
                               rtol=2e-2, atol=2e-2)

    print("KERNEL_OK")
</pallas_src>

<mosaic_0001>
module attributes {stable_mosaic.version = 11 : i64} {
  func.func @dense_block_kernel(%arg0: i32, %arg1: memref<4x256xbf16, #tpu.memory_space<vmem>>, %arg2: memref<32x4xbf16, #tpu.memory_space<vmem>>, %arg3: memref<32x1xf32, #tpu.memory_space<vmem>>, %arg4: memref<32x32xbf16, #tpu.memory_space<vmem>>, %arg5: memref<32x1xf32, #tpu.memory_space<vmem>>, %arg6: memref<32x64xbf16, #tpu.memory_space<vmem>>, %arg7: memref<32x1xf32, #tpu.memory_space<vmem>>, %arg8: memref<96x48xf32, #tpu.memory_space<vmem>>, %arg9: memref<96x48xf32, #tpu.memory_space<vmem>>, %arg10: memref<2x96x128xf32, #tpu.memory_space<vmem>>, %arg11: memref<96x256xf32, #tpu.memory_space<vmem>>) attributes {dimension_semantics = [#tpu.dimension_semantics<parallel>], iteration_bounds = array<i64: 1>, scalar_prefetch = 0 : i64, scratch_operands = 1 : i64, tpu.core_type = #tpu.core_type<tc>, window_params = [{transform_indices = @transform_0, window_bounds = array<i64: 4, 256>}, {pipeline_mode = #tpu.pipeline_mode<synchronous>, transform_indices = @transform_1, window_bounds = array<i64: 32, 4>}, {pipeline_mode = #tpu.pipeline_mode<synchronous>, transform_indices = @transform_2, window_bounds = array<i64: 32, 1>}, {pipeline_mode = #tpu.pipeline_mode<synchronous>, transform_indices = @transform_3, window_bounds = array<i64: 32, 32>}, {pipeline_mode = #tpu.pipeline_mode<synchronous>, transform_indices = @transform_4, window_bounds = array<i64: 32, 1>}, {pipeline_mode = #tpu.pipeline_mode<synchronous>, transform_indices = @transform_5, window_bounds = array<i64: 32, 64>}, {pipeline_mode = #tpu.pipeline_mode<synchronous>, transform_indices = @transform_6, window_bounds = array<i64: 32, 1>}, {pipeline_mode = #tpu.pipeline_mode<synchronous>, transform_indices = @transform_7, window_bounds = array<i64: 96, 48>}, {pipeline_mode = #tpu.pipeline_mode<synchronous>, transform_indices = @transform_8, window_bounds = array<i64: 96, 48>}, {transform_indices = @transform_9, window_bounds = array<i64: 2, 96, 128>}]} {
    %c0 = arith.constant 0 : index
    %c0_0 = arith.constant 0 : index
    %0 = vector.load %arg1[%c0, %c0_0] : memref<4x256xbf16, #tpu.memory_space<vmem>>, vector<4x256xbf16>
    %c0_1 = arith.constant 0 : index
    %c0_2 = arith.constant 0 : index
    %1 = vector.load %arg2[%c0_1, %c0_2] : memref<32x4xbf16, #tpu.memory_space<vmem>>, vector<32x4xbf16>
    %cst = arith.constant dense<0.000000e+00> : vector<32x256xf32>
    %2 = tpu.matmul %1, %0, %cst {dimension_numbers = #tpu.dot_dimension_numbers<[1], [0], [0], [1], [0, 0, 1, 1], [], []>} : vector<32x4xbf16>, vector<4x256xbf16>, vector<32x256xf32> -> vector<32x256xf32>
    %c0_3 = arith.constant 0 : index
    %c0_4 = arith.constant 0 : index
    %3 = vector.load %arg3[%c0_3, %c0_4] : memref<32x1xf32, #tpu.memory_space<vmem>>, vector<32x1xf32>
    %4 = vector.broadcast %3 : vector<32x1xf32> to vector<32x256xf32>
    %5 = arith.addf %2, %4 : vector<32x256xf32>
    %cst_5 = arith.constant 0.000000e+00 : f32
    %6 = vector.broadcast %cst_5 : f32 to vector<32x256xf32>
    %7 = arith.maximumf %5, %6 : vector<32x256xf32>
    %8 = arith.truncf %7 : vector<32x256xf32> to vector<32x256xbf16>
    %c0_6 = arith.constant 0 : index
    %c0_7 = arith.constant 0 : index
    %9 = vector.load %arg4[%c0_6, %c0_7] : memref<32x32xbf16, #tpu.memory_space<vmem>>, vector<32x32xbf16>
    %cst_8 = arith.constant dense<0.000000e+00> : vector<32x256xf32>
    %10 = tpu.matmul %9, %8, %cst_8 {dimension_numbers = #tpu.dot_dimension_numbers<[1], [0], [0], [1], [0, 0, 1, 1], [], []>} : vector<32x32xbf16>, vector<32x256xbf16>, vector<32x256xf32> -> vector<32x256xf32>
    %c0_9 = arith.constant 0 : index
    %c0_10 = arith.constant 0 : index
    %11 = vector.load %arg5[%c0_9, %c0_10] : memref<32x1xf32, #tpu.memory_space<vmem>>, vector<32x1xf32>
    %12 = vector.broadcast %11 : vector<32x1xf32> to vector<32x256xf32>
    %13 = arith.addf %10, %12 : vector<32x256xf32>
    %cst_11 = arith.constant 0.000000e+00 : f32
    %14 = vector.broadcast %cst_11 : f32 to vector<32x256xf32>
    %15 = arith.maximumf %13, %14 : vector<32x256xf32>
    %16 = arith.truncf %15 : vector<32x256xf32> to vector<32x256xbf16>
    %17 = tpu.concatenate %8, %16 in 0 : vector<32x256xbf16>, vector<32x256xbf16> -> vector<64x256xbf16>
    %c0_12 = arith.constant 0 : index
    %c0_13 = arith.constant 0 : index
    %18 = vector.load %arg6[%c0_12, %c0_13] : memref<32x64xbf16, #tpu.memory_space<vmem>>, vector<32x64xbf16>
    %cst_14 = arith.constant dense<0.000000e+00> : vector<32x256xf32>
    %19 = tpu.matmul %18, %17, %cst_14 {dimension_numbers = #tpu.dot_dimension_numbers<[1], [0], [0], [1], [0, 0, 1, 1], [], []>} : vector<32x64xbf16>, vector<64x256xbf16>, vector<32x256xf32> -> vector<32x256xf32>
    %c0_15 = arith.constant 0 : index
    %c0_16 = arith.constant 0 : index
    %20 = vector.load %arg7[%c0_15, %c0_16] : memref<32x1xf32, #tpu.memory_space<vmem>>, vector<32x1xf32>
    %21 = vector.broadcast %20 : vector<32x1xf32> to vector<32x256xf32>
    %22 = arith.addf %19, %21 : vector<32x256xf32>
    %cst_17 = arith.constant 0.000000e+00 : f32
    %23 = vector.broadcast %cst_17 : f32 to vector<32x256xf32>
    %24 = arith.maximumf %22, %23 : vector<32x256xf32>
    %c0_18 = arith.constant 0 : index
    %c0_19 = arith.constant 0 : index
    %25 = vector.load %arg11[%c0_18, %c0_19] : memref<96x256xf32, #tpu.memory_space<vmem>>, vector<32x256xf32>
    tpu.vector_store %arg11[%c0_18, %c0_19], %7 {strides = array<i32>} : memref<96x256xf32, #tpu.memory_space<vmem>>, vector<32x256xf32>,
    %c32 = arith.constant 32 : index
    %c0_20 = arith.constant 0 : index
    %26 = vector.load %arg11[%c32, %c0_20] : memref<96x256xf32, #tpu.memory_space<vmem>>, vector<32x256xf32>
    tpu.vector_store %arg11[%c32, %c0_20], %15 {strides = array<i32>} : memref<96x256xf32, #tpu.memory_space<vmem>>, vector<32x256xf32>,
    %c64 = arith.constant 64 : index
    %c0_21 = arith.constant 0 : index
    %27 = vector.load %arg11[%c64, %c0_21] : memref<96x256xf32, #tpu.memory_space<vmem>>, vector<32x256xf32>
    tpu.vector_store %arg11[%c64, %c0_21], %24 {strides = array<i32>} : memref<96x256xf32, #tpu.memory_space<vmem>>, vector<32x256xf32>,
    %c0_22 = arith.constant 0 : index
    %c0_23 = arith.constant 0 : index
    %28 = vector.load %arg8[%c0_22, %c0_23] : memref<96x48xf32, #tpu.memory_space<vmem>>, vector<96x48xf32>
    %c0_24 = arith.constant 0 : index
    %c0_25 = arith.constant 0 : index
    %29 = vector.load %arg9[%c0_24, %c0_25] : memref<96x48xf32, #tpu.memory_space<vmem>>, vector<96x48xf32>
    %c0_26 = arith.constant 0 : index
    %c0_27 = arith.constant 0 : index
    %30 = vector.load %arg11[%c0_26, %c0_27] : memref<96x256xf32, #tpu.memory_space<vmem>>, vector<96x128xf32>
    %cst_28 = arith.constant dense<0.000000e+00> : vector<96xf32>
    %31 = vector.multi_reduction <add>, %30, %cst_28 [1] : vector<96x128xf32> to vector<96xf32>
    %32 = vector.shape_cast %31 : vector<96xf32> to vector<96x1xf32>
    %cst_29 = arith.constant 1.280000e+02 : f32
    %33 = vector.broadcast %cst_29 : f32 to vector<96x1xf32>
    %34 = arith.divf %32, %33 : vector<96x1xf32>
    %35 = vector.broadcast %34 : vector<96x1xf32> to vector<96x48xf32>
    %36 = arith.mulf %28, %35 : vector<96x48xf32>
    %cst_30 = arith.constant dense<0.000000e+00> : vector<48xf32>
    %37 = vector.multi_reduction <add>, %36, %cst_30 [0] : vector<96x48xf32> to vector<48xf32>
    %38 = vector.shape_cast %37 : vector<48xf32> to vector<1x48xf32>
    %cst_31 = arith.constant 0.000000e+00 : f32
    %39 = vector.broadcast %cst_31 : f32 to vector<1x48xf32>
    %40 = arith.maximumf %38, %39 : vector<1x48xf32>
    %41 = vector.broadcast %40 : vector<1x48xf32> to vector<96x48xf32>
    %42 = arith.mulf %29, %41 : vector<96x48xf32>
    %cst_32 = arith.constant dense<0.000000e+00> : vector<96xf32>
    %43 = vector.multi_reduction <add>, %42, %cst_32 [1] : vector<96x48xf32> to vector<96xf32>
    %44 = vector.shape_cast %43 : vector<96xf32> to vector<96x1xf32>
    %45 = arith.negf %44 : vector<96x1xf32>
    %46 = math.exp %45 : vector<96x1xf32>
    %cst_33 = arith.constant 1.000000e+00 : f32
    %47 = vector.broadcast %cst_33 : f32 to vector<96x1xf32>
    %48 = arith.addf %47, %46 : vector<96x1xf32>
    %49 = arith.divf %47, %48 : vector<96x1xf32>
    %50 = vector.broadcast %49 : vector<96x1xf32> to vector<96x128xf32>
    %51 = arith.mulf %30, %50 : vector<96x128xf32>
    %c0_34 = arith.constant 0 : index
    %c0_35 = arith.constant 0 : index
    %c0_36 = arith.constant 0 : index
    %52 = vector.load %arg10[%c0_34, %c0_35, %c0_36] : memref<2x96x128xf32, #tpu.memory_space<vmem>>, vector<1x96x128xf32>
    %53 = vector.shape_cast %52 : vector<1x96x128xf32> to vector<96x128xf32>
    %54 = vector.shape_cast %51 : vector<96x128xf32> to vector<1x96x128xf32>
    tpu.vector_store %arg10[%c0_34, %c0_35, %c0_36], %54 {strides = array<i32>} : memref<2x96x128xf32, #tpu.memory_space<vmem>>, vector<1x96x128xf32>,
    %c0_37 = arith.constant 0 : index
    %c128 = arith.constant 128 : index
    %55 = vector.load %arg11[%c0_37, %c128] : memref<96x256xf32, #tpu.memory_space<vmem>>, vector<96x128xf32>
    %cst_38 = arith.constant dense<0.000000e+00> : vector<96xf32>
    %56 = vector.multi_reduction <add>, %55, %cst_38 [1] : vector<96x128xf32> to vector<96xf32>
    %57 = vector.shape_cast %56 : vector<96xf32> to vector<96x1xf32>
    %cst_39 = arith.constant 1.280000e+02 : f32
    %58 = vector.broadcast %cst_39 : f32 to vector<96x1xf32>
    %59 = arith.divf %57, %58 : vector<96x1xf32>
    %60 = vector.broadcast %59 : vector<96x1xf32> to vector<96x48xf32>
    %61 = arith.mulf %28, %60 : vector<96x48xf32>
    %cst_40 = arith.constant dense<0.000000e+00> : vector<48xf32>
    %62 = vector.multi_reduction <add>, %61, %cst_40 [0] : vector<96x48xf32> to vector<48xf32>
    %63 = vector.shape_cast %62 : vector<48xf32> to vector<1x48xf32>
    %cst_41 = arith.constant 0.000000e+00 : f32
    %64 = vector.broadcast %cst_41 : f32 to vector<1x48xf32>
    %65 = arith.maximumf %63, %64 : vector<1x48xf32>
    %66 = vector.broadcast %65 : vector<1x48xf32> to vector<96x48xf32>
    %67 = arith.mulf %29, %66 : vector<96x48xf32>
    %cst_42 = arith.constant dense<0.000000e+00> : vector<96xf32>
    %68 = vector.multi_reduction <add>, %67, %cst_42 [1] : vector<96x48xf32> to vector<96xf32>
    %69 = vector.shape_cast %68 : vector<96xf32> to vector<96x1xf32>
    %70 = arith.negf %69 : vector<96x1xf32>
    %71 = math.exp %70 : vector<96x1xf32>
    %cst_43 = arith.constant 1.000000e+00 : f32
    %72 = vector.broadcast %cst_43 : f32 to vector<96x1xf32>
    %73 = arith.addf %72, %71 : vector<96x1xf32>
    %74 = arith.divf %72, %73 : vector<96x1xf32>
    %75 = vector.broadcast %74 : vector<96x1xf32> to vector<96x128xf32>
    %76 = arith.mulf %55, %75 : vector<96x128xf32>
    %c1 = arith.constant 1 : index
    %c0_44 = arith.constant 0 : index
    %c0_45 = arith.constant 0 : index
    %77 = vector.load %arg10[%c1, %c0_44, %c0_45] : memref<2x96x128xf32, #tpu.memory_space<vmem>>, vector<1x96x128xf32>
    %78 = vector.shape_cast %77 : vector<1x96x128xf32> to vector<96x128xf32>
    %79 = vector.shape_cast %76 : vector<96x128xf32> to vector<1x96x128xf32>
    tpu.vector_store %arg10[%c1, %c0_44, %c0_45], %79 {strides = array<i32>} : memref<2x96x128xf32, #tpu.memory_space<vmem>>, vector<1x96x128xf32>,
    return
  }
  func.func @transform_0(%arg0: i32) -> (i32, i32) {
    %c0_i32 = arith.constant 0 : i32
    %c0_i32_0 = arith.constant 0 : i32
    return %c0_i32, %arg0 : i32, i32
  }
  func.func @transform_1(%arg0: i32) -> (i32, i32) {
    %c0_i32 = arith.constant 0 : i32
    %c0_i32_0 = arith.constant 0 : i32
    %c0_i32_1 = arith.constant 0 : i32
    return %c0_i32, %c0_i32_0 : i32, i32
  }
  func.func @transform_2(%arg0: i32) -> (i32, i32) {
    %c0_i32 = arith.constant 0 : i32
    %c0_i32_0 = arith.constant 0 : i32
    %c0_i32_1 = arith.constant 0 : i32
    return %c0_i32, %c0_i32_0 : i32, i32
  }
  func.func @transform_3(%arg0: i32) -> (i32, i32) {
    %c0_i32 = arith.constant 0 : i32
    %c0_i32_0 = arith.constant 0 : i32
    %c0_i32_1 = arith.constant 0 : i32
    return %c0_i32, %c0_i32_0 : i32, i32
  }
  func.func @transform_4(%arg0: i32) -> (i32, i32) {
    %c0_i32 = arith.constant 0 : i32
    %c0_i32_0 = arith.constant 0 : i32
    %c0_i32_1 = arith.constant 0 : i32
    return %c0_i32, %c0_i32_0 : i32, i32
  }
  func.func @transform_5(%arg0: i32) -> (i32, i32) {
    %c0_i32 = arith.constant 0 : i32
    %c0_i32_0 = arith.constant 0 : i32
    %c0_i32_1 = arith.constant 0 : i32
    return %c0_i32, %c0_i32_0 : i32, i32
  }
  func.func @transform_6(%arg0: i32) -> (i32, i32) {
    %c0_i32 = arith.constant 0 : i32
    %c0_i32_0 = arith.constant 0 : i32
    %c0_i32_1 = arith.constant 0 : i32
    return %c0_i32, %c0_i32_0 : i32, i32
  }
  func.func @transform_7(%arg0: i32) -> (i32, i32) {
    %c0_i32 = arith.constant 0 : i32
    %c0_i32_0 = arith.constant 0 : i32
    %c0_i32_1 = arith.constant 0 : i32
    return %c0_i32, %c0_i32_0 : i32, i32
  }
  func.func @transform_8(%arg0: i32) -> (i32, i32) {
    %c0_i32 = arith.constant 0 : i32
    %c0_i32_0 = arith.constant 0 : i32
    %c0_i32_1 = arith.constant 0 : i32
    return %c0_i32, %c0_i32_0 : i32, i32
  }
  func.func @transform_9(%arg0: i32) -> (i32, i32, i32) {
    %c0_i32 = arith.constant 0 : i32
    %c0_i32_0 = arith.constant 0 : i32
    %c0_i32_1 = arith.constant 0 : i32
    return %arg0, %c0_i32, %c0_i32_0 : i32, i32, i32
  }
}

</mosaic_0001>

<bundles_post_ra>
// kernel: tpu_custom_call.1
= control target key start
LH: loop header
LB: loop body
LE: loop exit
PB: predicated region body
PF: predicated region fallthrough
CT: control target
= control target key end

     0   :  { %vm89_vm0 = vcmask 1041408   ;;  %v1090_v3 = vmov 0   ;;  %vm82_vm1 = vcmask 31744   ;;  %s1479_s0 = inlined_call_operand.vmem [shape: bf16[4,256], index: 0, kind: input, shape index: {}]   ;;  %s1480_s1 = inlined_call_operand.vmem [shape: bf16[32,4], index: 1, kind: input, shape index: {}]   ;;  %s1481_s2 = inlined_call_operand.vmem [shape: f32[32,1], index: 2, kind: input, shape index: {}]   ;;  %s1482_s3 = inlined_call_operand.vmem [shape: bf16[32,32], index: 3, kind: input, shape index: {}]   ;;  %s1483_s4 = inlined_call_operand.vmem [shape: f32[32,1], index: 4, kind: input, shape index: {}]   ;;  %s1484_s5 = inlined_call_operand.vmem [shape: bf16[32,64], index: 5, kind: input, shape index: {}]   ;;  %s1485_s6 = inlined_call_operand.vmem [shape: f32[32,1], index: 6, kind: input, shape index: {}]   ;;  %s1486_s7 = inlined_call_operand.vmem [shape: f32[96,48], index: 7, kind: input, shape index: {}]   ;;  %s1487_s8 = inlined_call_operand.vmem [shape: f32[96,48], index: 8, kind: input, shape index: {}]   ;;  %s1488_s9 = inlined_call_operand.hbm [shape: f32[2,96,128], index: 9, kind: output, shape index: {}]  }
   0x1   :  { %v914_v0 = vld.sshfl [vmem:[%s1479_s0] sm:$0x33 pattern:$0x76325410]  ;;  %128 = vmatprep.mubr.bf16.mxu0 %v1090_v3  ;;  %962 = vset.pattern.permute.xlu0 %v1090_v3  ;;  %v41_v6 = vld [vmem:[%s1481_s2 + $0x10] sm:$0xff]  ;;  %v40_v7 = vld [vmem:[%s1481_s2 + $0x8] sm:$0xff] }
   0x2   :  { %v81_v1 = vcombine.high %v914_v0, %v914_v0  ;;  %v91_v2 = vsel %vm89_vm0, %v914_v0, 0  ;;  %963 = vset.pattern.permute.xlu1 %v1090_v3  ;;  %238 = vmatprep.mubr.bf16.mxu1 %v1090_v3  ;;  %v964_v4 = vld [vmem:[%s1480_s1] sm:$0xff]   ;;  %v42_v8 = vld [vmem:[%s1481_s2 + $0x18] sm:$0xff] }
   0x3   :  { %v39_v5 = vld [vmem:[%s1481_s2] sm:$0xff]  ;;  %55 = vperm.xlu1 %963, %v41_v6  }
   0x4   :  { %915 = vmatprep.subr.msk.bf16.mxu0 %vm89_vm0, %v81_v1  ;;  %45 = vperm.xlu0 %962, %v39_v5   ;;  %v165_v9 = vld [vmem:[%s1483_s4] sm:$0xff] }
   0x5   :  { %97 = vmatpush1.bf16.msra.mxu0 %v91_v2 }
   0x7   :  { %60 = vperm.xlu1 %963, %v42_v8  }
   0x8   :  { %916 = vmatmul.mubr.msk.bf16.vlgmr.msra.gmra.mrb[0].mxu0 %vm82_vm1, %v964_v4  ;;  %50 = vperm.xlu0 %962, %v40_v7  }
   0x9   :  { %138 = vmatprep.mubr.bf16.mxu0 %v1090_v3 }
   0xa   :  { %14 = vsyncpa [#allocation4], 0  ;;  %v166_v10 = vld [vmem:[%s1483_s4 + $0x8] sm:$0xff]  ;;  %v167_v12 = vld [vmem:[%s1483_s4 + $0x10] sm:$0xff]  ;;  %vm199_vm2 = vcmask 261120   ;;  %vm309_vm3 = vcmask 523264  }
   0xb   :  { %v965_v11 = vld [vmem:[%s1480_s1 + $0x8] sm:$0xff]   ;;  %176 = vperm.xlu1 %963, %v166_v10   ;;  %v168_v13 = vld [vmem:[%s1483_s4 + $0x18] sm:$0xff]  ;;  %v275_v14 = vld [vmem:[%s1485_s6] sm:$0xff]  ;;  %vm486_vm4 = vcmask 392192  }
   0xc   :  { %171 = vperm.xlu0 %962, %v165_v9   ;;  %v276_v15 = vld [vmem:[%s1485_s6 + $0x8] sm:$0xff]  ;;  %v277_v16 = vld [vmem:[%s1485_s6 + $0x10] sm:$0xff]  ;;  %v278_v17 = vld [vmem:[%s1485_s6 + $0x18] sm:$0xff] }
   0xd   :  { %v966_v50 = vld [vmem:[%s1482_s3] sm:$0xff]   ;;  %v967_v51 = vld [vmem:[%s1482_s3 + $0x8] sm:$0xff]  }
   0xf   :  { %186 = vperm.xlu1 %963, %v168_v13  }
  0x10   :  { %917 = vmatmul.mubr.msk.bf16.gmra.mrb[4].mxu0 %vm82_vm1, %v965_v11  ;;  %181 = vperm.xlu0 %962, %v167_v12  }
  0x11   :  { %348 = vmatprep.mubr.bf16.mxu0 %v1090_v3 }
  0x13   :  { %286 = vperm.xlu1 %963, %v276_v15  }
  0x14   :  { %281 = vperm.xlu0 %962, %v275_v14  }
  0x17   :  { %296 = vperm.xlu1 %963, %v278_v17  }
  0x18   :  { %291 = vperm.xlu0 %962, %v277_v16  }
  0x82   :  { %v56_v28 = vpop.permute.xlu1 %55 }
  0x83   :  { %v46_v18 = vpop.permute.xlu0 %45 }
  0x86   :  { %v61_v38 = vpop.permute.xlu1 %60 }
  0x87   :  { %v51_v22 = vpop.permute.xlu0 %50 }
  0x8a   :  { %v177_v56 = vpop.permute.xlu1 %176 }
  0x8b   :  { %v172_v52 = vpop.permute.xlu0 %171 }
  0x8e   :  { %v187_v8 = vpop.permute.xlu1 %186 }
  0x8f   :  { %v182_v2 = vpop.permute.xlu0 %181 }
  0xdb   :  { %v130_v19 = vpop.f32.mrb[0].mxu0 }
  0xdc   :  { %v131_v20 = vadd.f32 %v130_v19, %v46_v18  ;;  %v132_v21 = vpop.f32.mrb[1].mxu0 }
  0xdd   :  { %v133_v23 = vadd.f32 %v132_v21, %v46_v18  ;;  %v134_v24 = vpop.f32.mrb[2].mxu0  ;;  %v969_v21 = vld [vmem:[%s1484_s5 + $0x8] sm:$0xff]  }
  0xde   :  { %v1197_v25 = vmax.f32 %v131_v20, 0.0  ;;  %v135_v26 = vadd.f32 %v134_v24, %v51_v22  ;;  %v136_v27 = vpop.f32.mrb[3].mxu0  ;;  %v968_v20 = vld [vmem:[%s1484_s5] sm:$0xff]  }
  0xdf   :  { %v137_v29 = vadd.f32 %v136_v27, %v51_v22  ;;  %v1202_v31 = vmax.f32 %v133_v23, 0.0  ;;  %v282_v22 = vpop.permute.xlu0 %281 }
  0xe0   :  { %v1199_v30 = vmax.f32 %v135_v26, 0.0  ;;  %437 = vadd.xlane.f32.xlu0 %v1197_v25 }
  0xe1   :  { %v1204_v32 = vmax.f32 %v137_v29, 0.0 }
  0xe2   :  { %439 = vadd.xlane.f32.xlu1 %v1199_v30  ;;  %v157_v37 = vpack.c.bf16 %v1199_v30, %v1197_v25 }
  0xe3   :  { %v140_v33 = vpop.f32.mrb[4].mxu0  ;;  %v158_v34 = vpack.c.bf16 %v1204_v32, %v1202_v31  ;;  %v292_v23 = vpop.permute.xlu0 %291 }
  0xe4   :  { %v141_v35 = vadd.f32 %v140_v33, %v56_v28  ;;  %v142_v36 = vpop.f32.mrb[5].mxu0  ;;  %673 = vadd.xlane.f32.xlu0 %v1202_v31 }
  0xe5   :  { %v143_v39 = vadd.f32 %v142_v36, %v56_v28  ;;  %v144_v40 = vpop.f32.mrb[6].mxu0  ;;  %206 = vmatprep.subr.bf16.mxu1 %v158_v34  ;;  %316 = vmatprep.subr.bf16.mxu0 %v158_v34 }
  0xe6   :  { %v1212_v41 = vmax.f32 %v141_v35, 0.0  ;;  %v145_v42 = vadd.f32 %v144_v40, %v61_v38  ;;  %v146_v43 = vpop.f32.mrb[7].mxu0  ;;  %207 = vmatpush1.bf16.msra.mxu1 %v157_v37  ;;  %317 = vmatpush1.bf16.msra.mxu0 %v157_v37 }
  0xe7   :  { %v147_v44 = vadd.f32 %v146_v43, %v61_v38  ;;  %v1218_v46 = vmax.f32 %v143_v39, 0.0  ;;  %v287_v39 = vpop.permute.xlu1 %286 }
  0xe8   :  { %v1214_v45 = vmax.f32 %v145_v42, 0.0  ;;  %441 = vadd.xlane.f32.xlu1 %v1212_v41  ;;  %675 = vadd.xlane.f32.xlu0 %v1204_v32 }
  0xe9   :  { %v1220_v47 = vmax.f32 %v147_v44, 0.0 }
  0xea   :  { %v159_v49 = vpack.c.bf16 %v1214_v45, %v1212_v41 }
  0xeb   :  { %v160_v48 = vpack.c.bf16 %v1220_v47, %v1218_v46 }
  0xec   :  { %443 = vadd.xlane.f32.xlu1 %v1214_v45  ;;  %677 = vadd.xlane.f32.xlu0 %v1218_v46 }
  0xed   :  { %208 = vmatprep.subr.bf16.mxu1 %v160_v48  ;;  %318 = vmatprep.subr.bf16.mxu0 %v160_v48 }
  0xee   :  { %209 = vmatpush1.bf16.msra.mxu1 %v159_v49  ;;  %319 = vmatpush1.bf16.msra.mxu0 %v159_v49 }
  0xef   :  { %950 = vmatprep.subr.bf16.mxu1 %v158_v34 }
  0xf0   :  { %679 = vadd.xlane.f32.xlu0 %v1220_v47 }
  0xf1   :  { %920 = vmatmul.mubr.msk.bf16.vlgmr.msra.gmra.mrb[0].mxu1 %vm199_vm2, %v966_v50 }
  0xf2   :  { %954 = vmatpush1.bf16.msra.mxu1 %v157_v37  ;;  %248 = vmatprep.mubr.bf16.mxu1 %v1090_v3 }
  0xf3   :  { %951 = vmatprep.subr.bf16.mxu1 %v160_v48 }
  0xf6   :  { %955 = vmatpush1.bf16.msra.mxu1 %v159_v49 }
  0xf9   :  { %921 = vmatmul.mubr.msk.bf16.gmra.mrb[4].mxu1 %vm199_vm2, %v967_v51  ;;  %v297_v51 = vpop.permute.xlu1 %296 }
  0xfa   :  { %358 = vmatprep.mubr.bf16.mxu1 %v1090_v3 }
 0x1c4   :  { %v240_v53 = vpop.f32.mrb[0].mxu1 }
 0x1c5   :  { %v241_v54 = vadd.f32 %v240_v53, %v172_v52  ;;  %v242_v55 = vpop.f32.mrb[1].mxu1 }
 0x1c6   :  { %v243_v57 = vadd.f32 %v242_v55, %v172_v52  ;;  %v244_v58 = vpop.f32.mrb[2].mxu1 }
 0x1c7   :  { %v1237_v59 = vmax.f32 %v241_v54, 0.0  ;;  %v245_v60 = vadd.f32 %v244_v58, %v177_v56  ;;  %v246_v61 = vpop.f32.mrb[3].mxu1  ;;  %v438_v58 = vpop.xlane.xlu0 %437 }
 0x1c8   :  { %v1239_v62 = vmax.f32 %v243_v57, 0.0  ;;  %v247_v63 = vadd.f32 %v246_v61, %v177_v56 }
 0x1c9   :  { %v1241_v0 = vmax.f32 %v245_v60, 0.0  ;;  %445 = vadd.xlane.f32.xlu1 %v1237_v59 }
 0x1ca   :  { %v1244_v1 = vmax.f32 %v247_v63, 0.0  ;;  %681 = vadd.xlane.f32.xlu0 %v1239_v62  ;;  %v440_v63 = vpop.xlane.xlu1 %439 }
 0x1cb   :  { %v267_v5 = vpack.c.bf16 %v1241_v0, %v1237_v59  ;;  %v674_v60 = vpop.xlane.xlu0 %673 }
 0x1cc   :  { %v250_v3 = vpop.f32.mrb[4].mxu1  ;;  %v268_v4 = vpack.c.bf16 %v1244_v1, %v1239_v62 }
 0x1cd   :  { %v251_v6 = vadd.f32 %v250_v3, %v182_v2  ;;  %v252_v7 = vpop.f32.mrb[5].mxu1  ;;  %447 = vadd.xlane.f32.xlu1 %v1241_v0 }
 0x1ce   :  { %v253_v9 = vadd.f32 %v252_v7, %v182_v2  ;;  %v254_v10 = vpop.f32.mrb[6].mxu1  ;;  %683 = vadd.xlane.f32.xlu0 %v1244_v1  ;;  %320 = vmatprep.subr.bf16.mxu0 %v268_v4  ;;  %v442_v2 = vpop.xlane.xlu1 %441 }
 0x1cf   :  { %v1253_v11 = vmax.f32 %v251_v6, 0.0  ;;  %v255_v12 = vadd.f32 %v254_v10, %v187_v8  ;;  %952 = vmatprep.subr.bf16.mxu1 %v268_v4  ;;  %v256_v13 = vpop.f32.mrb[7].mxu1  ;;  %321 = vmatpush1.bf16.msra.mxu0 %v267_v5  ;;  %v676_v61 = vpop.xlane.xlu0 %675  ;;  %v463_v10 = vmul.f32 0.0078125, %v440_v63 }
 0x1d0   :  { %v1255_v14 = vmax.f32 %v253_v9, 0.0  ;;  %v257_v15 = vadd.f32 %v256_v13, %v187_v8  ;;  %956 = vmatpush1.bf16.msra.mxu1 %v267_v5  ;;  %v462_v13 = vmul.f32 0.0078125, %v438_v58 }
 0x1d1   :  { %v1257_v16 = vmax.f32 %v255_v12, 0.0  ;;  %449 = vadd.xlane.f32.xlu1 %v1253_v11  ;;  %v402_v12 = vld [vmem:[%s1486_s7 + $0x8] sm:$0xff] }
 0x1d2   :  { %v1260_v17 = vmax.f32 %v257_v15, 0.0  ;;  %685 = vadd.xlane.f32.xlu0 %v1255_v14  ;;  %v444_v4 = vpop.xlane.xlu1 %443  ;;  %v698_v15 = vmul.f32 0.0078125, %v676_v61  ;;  %v405_v61 = vld [vmem:[%s1486_s7 + $0x20] sm:$0xff] }
 0x1d3   :  { %v269_v19 = vpack.c.bf16 %v1257_v16, %v1253_v11  ;;  %v678_v3 = vpop.xlane.xlu0 %677 }
 0x1d4   :  { %v270_v18 = vpack.c.bf16 %v1260_v17, %v1255_v14 }
 0x1d5   :  { %451 = vadd.xlane.f32.xlu1 %v1257_v16 }
 0x1d6   :  { %687 = vadd.xlane.f32.xlu0 %v1260_v17  ;;  %322 = vmatprep.subr.bf16.mxu0 %v270_v18 }
 0x1d7   :  { %953 = vmatprep.subr.bf16.mxu1 %v270_v18  ;;  %323 = vmatpush1.bf16.msra.mxu0 %v269_v19  ;;  %v680_v5 = vpop.xlane.xlu0 %679  ;;  %v401_v18 = vld [vmem:[%s1486_s7] sm:$0xff] }
 0x1d8   :  { %957 = vmatpush1.bf16.msra.mxu1 %v269_v19  ;;  %v464_v19 = vmul.f32 0.0078125, %v442_v2 }
 0x1da   :  { %924 = vmatmul.mubr.msk.bf16.vlgmr.msra.gmra.mrb[8].mxu0 %vm309_vm3, %v968_v20  ;;  %v475_v20 = vmul.f32 %v463_v10, %v402_v12 }
 0x1db   :  { %925 = vmatmul.mubr.msk.bf16.vlgmr.msra.gmra.mrb[8].mxu1 %vm309_vm3, %v969_v21  ;;  %v697_v21 = vmul.f32 0.0078125, %v674_v60 }
 0x1dd   :  { %v709_v58 = vmul.f32 %v697_v21, %v401_v18 }
 0x256   :  { %v446_v6 = vpop.xlane.xlu1 %445 }
 0x257   :  { %v682_v7 = vpop.xlane.xlu0 %681 }
 0x258   :  { %v701_v63 = vmul.f32 0.0078125, %v682_v7  ;;  %v721_v7 = vsel %vm486_vm4, %v709_v58, 0.0 }
 0x25a   :  { %v448_v8 = vpop.xlane.xlu1 %447 }
 0x25b   :  { %v684_v9 = vpop.xlane.xlu0 %683 }
 0x2ad   :  { %v350_v24 = vpop.f32.mrb[8].mxu0 }
 0x2ae   :  { %v1275_v26 = vadd.f32 %v350_v24, %v282_v22  ;;  %v360_v27 = vpop.f32.mrb[8].mxu1  ;;  %v352_v28 = vpop.f32.mrb[9].mxu0 }
 0x2af   :  { %v1277_v29 = vadd.f32 %v352_v28, %v282_v22  ;;  %v362_v33 = vpop.f32.mrb[9].mxu1  ;;  %v354_v34 = vpop.f32.mrb[10].mxu0  ;;  %v1280_v36 = vadd.f32 %v360_v27, %v292_v23  ;;  %v403_v22 = vld [vmem:[%s1486_s7 + $0x10] sm:$0xff]  ;;  %v465_v27 = vmul.f32 0.0078125, %v444_v4 }
 0x2b0   :  { %v369_v35 = vmax.f32 %v1275_v26, 0.0  ;;  %v364_v37 = vpop.f32.mrb[10].mxu1  ;;  %v356_v38 = vpop.f32.mrb[11].mxu0  ;;  %v1283_v42 = vadd.f32 %v362_v33, %v292_v23  ;;  %v1290_v48 = vadd.f32 %v354_v34, %v287_v39  ;;  %v699_v23 = vmul.f32 0.0078125, %v678_v3 }
 0x2b1   :  { %v370_v40 = vmax.f32 %v1277_v29, 0.0  ;;  %v366_v43 = vpop.f32.mrb[11].mxu1  ;;  %v373_v44 = vmax.f32 %v1280_v36, 0.0  ;;  %v1293_v50 = vadd.f32 %v356_v38, %v287_v39  ;;  %v1300_v53 = vadd.f32 %v364_v37, %v297_v51  ;;  %v450_v24 = vpop.xlane.xlu1 %449  ;;  %v404_v37 = vld [vmem:[%s1486_s7 + $0x18] sm:$0xff] }
 0x2b2   :  { %453 = vadd.xlane.f32.xlu1 %v369_v35  ;;  %v374_v49 = vmax.f32 %v1283_v42, 0.0  ;;  %v371_v52 = vmax.f32 %v1290_v48, 0.0  ;;  %v1303_v55 = vadd.f32 %v366_v43, %v297_v51  ;;  %v686_v28 = vpop.xlane.xlu0 %685  ;;  %v474_v33 = vmul.f32 %v462_v13, %v401_v18 }
 0x2b3   :  { %689 = vadd.xlane.f32.xlu0 %v370_v40  ;;  %v372_v54 = vmax.f32 %v1293_v50, 0.0  ;;  %v375_v56 = vmax.f32 %v1300_v53, 0.0  ;;  %v710_v34 = vmul.f32 %v698_v15, %v402_v12  ;;  %v700_v38 = vmul.f32 0.0078125, %v680_v5  ;;  %v406_v5 = vld [vmem:[%s1486_s7 + $0x28] sm:$0xff] }
 0x2b4   :  { %v376_v57 = vmax.f32 %v1303_v55, 0.0  ;;  %v476_v39 = vmul.f32 %v464_v19, %v403_v22  ;;  %v466_v43 = vmul.f32 0.0078125, %v446_v6  ;;  %v488_v51 = vsel %vm486_vm4, %v475_v20, 0.0 }
 0x2b5   :  { %v711_v60 = vmul.f32 %v699_v23, %v403_v22  ;;  %v477_v2 = vmul.f32 %v465_v27, %v404_v37  ;;  %v467_v3 = vmul.f32 0.0078125, %v448_v8  ;;  %v487_v4 = vsel %vm486_vm4, %v474_v33, 0.0  ;;  %v452_v13 = vpop.xlane.xlu1 %451  ;;  %v407_v23 = vld [vmem:[%s1486_s7 + $0x30] sm:$0xff] }
 0x2b6   :  { %457 = vadd.xlane.f32.xlu1 %v373_v44  ;;  %v722_v10 = vsel %vm486_vm4, %v710_v34, 0.0  ;;  %v712_v12 = vmul.f32 %v700_v38, %v404_v37  ;;  %v702_v6 = vmul.f32 0.0078125, %v684_v9  ;;  %v489_v15 = vadd.f32 %v488_v51, %v487_v4  ;;  %v688_v21 = vpop.xlane.xlu0 %687 }
 0x2b7   :  { %693 = vadd.xlane.f32.xlu0 %v374_v49  ;;  %v490_v18 = vsel %vm486_vm4, %v476_v39, 0.0  ;;  %v478_v19 = vmul.f32 %v466_v43, %v405_v61  ;;  %v468_v20 = vmul.f32 0.0078125, %v450_v24  ;;  %v724_v8 = vsel %vm486_vm4, %v711_v60, 0.0  ;;  %v408_v43 = vld [vmem:[%s1486_s7 + $0x38] sm:$0xff] }
 0x2b8   :  { %v713_v22 = vmul.f32 %v701_v63, %v405_v61  ;;  %v703_v27 = vmul.f32 0.0078125, %v686_v28  ;;  %v723_v33 = vadd.f32 %v722_v10, %v721_v7  ;;  %v492_v9 = vsel %vm486_vm4, %v477_v2, 0.0 }
 0x2b9   :  { %v479_v34 = vmul.f32 %v467_v3, %v406_v5  ;;  %v469_v37 = vmul.f32 0.0078125, %v452_v13  ;;  %v491_v38 = vadd.f32 %v490_v18, %v489_v15  ;;  %v726_v39 = vsel %vm486_vm4, %v712_v12, 0.0  ;;  %v409_v12 = vld [vmem:[%s1486_s7 + $0x40] sm:$0xff] }
 0x2ba   :  { %455 = vadd.xlane.f32.xlu1 %v371_v52  ;;  %v714_v24 = vmul.f32 %v702_v6, %v406_v5  ;;  %v704_v51 = vmul.f32 0.0078125, %v688_v21  ;;  %v725_v60 = vadd.f32 %v724_v8, %v723_v33  ;;  %v494_v61 = vsel %vm486_vm4, %v478_v19, 0.0 }
 0x2bb   :  { %691 = vadd.xlane.f32.xlu0 %v372_v54  ;;  %v480_v63 = vmul.f32 %v468_v20, %v407_v23  ;;  %v493_v10 = vadd.f32 %v492_v9, %v491_v38  ;;  %v728_v2 = vsel %vm486_vm4, %v713_v22, 0.0  ;;  %v715_v3 = vmul.f32 %v703_v27, %v407_v23 }
 0x2bc   :  { %v727_v6 = vadd.f32 %v726_v39, %v725_v60  ;;  %v496_v13 = vsel %vm486_vm4, %v479_v34, 0.0  ;;  %v481_v15 = vmul.f32 %v469_v37, %v408_v43  ;;  %v730_v21 = vsel %vm486_vm4, %v714_v24, 0.0  ;;  %v411_v24 = vld [vmem:[%s1486_s7 + $0x50] sm:$0xff] }
 0x2bd   :  { %v495_v18 = vadd.f32 %v494_v61, %v493_v10  ;;  %v716_v19 = vmul.f32 %v704_v51, %v408_v43  ;;  %v498_v8 = vsel %vm486_vm4, %v480_v63, 0.0  ;;  %v732_v27 = vsel %vm486_vm4, %v715_v3, 0.0  ;;  %v410_v43 = vld [vmem:[%s1486_s7 + $0x48] sm:$0xff] }
 0x2be   :  { %459 = vadd.xlane.f32.xlu1 %v375_v56  ;;  %v729_v7 = vadd.f32 %v728_v2, %v727_v6  ;;  %v500_v39 = vsel %vm486_vm4, %v481_v15, 0.0 }
 0x2bf   :  { %695 = vadd.xlane.f32.xlu0 %v376_v57  ;;  %v497_v23 = vadd.f32 %v496_v13, %v495_v18  ;;  %v734_v37 = vsel %vm486_vm4, %v716_v19, 0.0  ;;  %v412_v18 = vld [vmem:[%s1486_s7 + $0x58] sm:$0xff] }
 0x2c0   :  { %v731_v38 = vadd.f32 %v730_v21, %v729_v7 }
 0x2c1   :  { %v499_v34 = vadd.f32 %v498_v8, %v497_v23 }
 0x2c2   :  { %v733_v60 = vadd.f32 %v732_v27, %v731_v38 }
 0x33f   :  { %v454_v58 = vpop.xlane.xlu1 %453 }
 0x340   :  { %v470_v28 = vmul.f32 0.0078125, %v454_v58  ;;  %v690_v4 = vpop.xlane.xlu0 %689 }
 0x341   :  { %v705_v5 = vmul.f32 0.0078125, %v690_v4  ;;  %v501_v4 = vadd.f32 %v500_v39, %v499_v34 }
 0x342   :  { %v482_v33 = vmul.f32 %v470_v28, %v409_v12 }
 0x343   :  { %v458_v20 = vpop.xlane.xlu1 %457  ;;  %v717_v9 = vmul.f32 %v705_v5, %v409_v12  ;;  %v735_v12 = vadd.f32 %v734_v37, %v733_v60 }
 0x344   :  { %v694_v22 = vpop.xlane.xlu0 %693  ;;  %v472_v58 = vmul.f32 0.0078125, %v458_v20  ;;  %v502_v61 = vsel %vm486_vm4, %v482_v33, 0.0 }
 0x345   :  { %v736_v10 = vsel %vm486_vm4, %v717_v9, 0.0  ;;  %v707_v2 = vmul.f32 0.0078125, %v694_v22  ;;  %v503_v13 = vadd.f32 %v502_v61, %v501_v4 }
 0x346   :  { %v484_v5 = vmul.f32 %v472_v58, %v411_v24  ;;  %v737_v19 = vadd.f32 %v736_v10, %v735_v12 }
 0x347   :  { %v456_v51 = vpop.xlane.xlu1 %455  ;;  %v719_v33 = vmul.f32 %v707_v2, %v411_v24 }
 0x348   :  { %v471_v63 = vmul.f32 0.0078125, %v456_v51  ;;  %v692_v28 = vpop.xlane.xlu0 %691  ;;  %v506_v9 = vsel %vm486_vm4, %v484_v5, 0.0 }
 0x349   :  { %v706_v3 = vmul.f32 0.0078125, %v692_v28 }
 0x34a   :  { %v483_v6 = vmul.f32 %v471_v63, %v410_v43 }
 0x34b   :  { %v718_v15 = vmul.f32 %v706_v3, %v410_v43  ;;  %v460_v21 = vpop.xlane.xlu1 %459  ;;  %v740_v43 = vsel %vm486_vm4, %v719_v33, 0.0 }
 0x34c   :  { %v504_v20 = vsel %vm486_vm4, %v483_v6, 0.0  ;;  %v473_v7 = vmul.f32 0.0078125, %v460_v21  ;;  %v696_v8 = vpop.xlane.xlu0 %695  ;;  %v414_v6 = vld [vmem:[%s1487_s8 + $0x8] sm:$0xff]  ;;  %v415_v21 = vld [vmem:[%s1487_s8 + $0x10] sm:$0xff] }
 0x34d   :  { %v505_v23 = vadd.f32 %v504_v20, %v503_v13  ;;  %v738_v22 = vsel %vm486_vm4, %v718_v15, 0.0  ;;  %v708_v27 = vmul.f32 0.0078125, %v696_v8  ;;  %v413_v13 = vld [vmem:[%s1487_s8] sm:$0xff] }
 0x34e   :  { %v739_v38 = vadd.f32 %v738_v22, %v737_v19  ;;  %v485_v39 = vmul.f32 %v473_v7, %v412_v18 }
 0x34f   :  { %v507_v58 = vadd.f32 %v506_v9, %v505_v23  ;;  %v720_v34 = vmul.f32 %v708_v27, %v412_v18  ;;  %v416_v18 = vld [vmem:[%s1487_s8 + $0x18] sm:$0xff]  ;;  %v418_v27 = vld [vmem:[%s1487_s8 + $0x28] sm:$0xff]  ;;  %v417_v9 = vld [vmem:[%s1487_s8 + $0x20] sm:$0xff] }
 0x350   :  { %v508_v37 = vsel %vm486_vm4, %v485_v39, 0.0  ;;  %v741_v60 = vadd.f32 %v740_v43, %v739_v38  ;;  %v420_v43 = vld [vmem:[%s1487_s8 + $0x38] sm:$0xff] }
 0x351   :  { %v509_v51 = vadd.f32 %v508_v37, %v507_v58  ;;  %v742_v63 = vsel %vm486_vm4, %v720_v34, 0.0 }
 0x352   :  { %v743_v28 = vadd.f32 %v742_v63, %v741_v60 }
 0x353   :  { %v510_v61 = vrot.slane %v509_v51, 4 }
 0x354   :  { %v744_v2 = vrot.slane %v743_v28, 4 }
 0x355   :  { %v511_v24 = vadd.f32 %v510_v61, %v509_v51  ;;  %v419_v51 = vld [vmem:[%s1487_s8 + $0x30] sm:$0xff] }
 0x356   :  { %v745_v5 = vadd.f32 %v744_v2, %v743_v28 }
 0x357   :  { %v512_v4 = vrot.slane %v511_v24, 2 }
 0x358   :  { %v746_v7 = vrot.slane %v745_v5, 2 }
 0x359   :  { %v513_v10 = vadd.f32 %v512_v4, %v511_v24  ;;  %v422_v4 = vld [vmem:[%s1487_s8 + $0x48] sm:$0xff] }
 0x35a   :  { %v747_v38 = vadd.f32 %v746_v7, %v745_v5  ;;  %v423_v7 = vld [vmem:[%s1487_s8 + $0x50] sm:$0xff] }
 0x35b   :  { %v514_v3 = vrot.slane %v513_v10, 1 }
 0x35c   :  { %v748_v60 = vrot.slane %v747_v38, 1 }
 0x35d   :  { %v515_v12 = vadd.f32 %v514_v3, %v513_v10  ;;  %v421_v10 = vld [vmem:[%s1487_s8 + $0x40] sm:$0xff] }
 0x35e   :  { %v749_v2 = vadd.f32 %v748_v60, %v747_v38 }
 0x35f   :  { %v516_v15 = vmax.f32 %v515_v12, 0.0 }
 0x361   :  { %v518_v19 = vmul.f32 %v516_v15, %v414_v6  ;;  %v517_v20 = vmul.f32 %v516_v15, %v413_v13  ;;  %v520_v23 = vmul.f32 %v516_v15, %v416_v18  ;;  %v519_v22 = vmul.f32 %v516_v15, %v415_v21 }
 0x362   :  { %v522_v34 = vmul.f32 %v516_v15, %v418_v27  ;;  %v521_v37 = vmul.f32 %v516_v15, %v417_v9  ;;  %v524_v24 = vmul.f32 %v516_v15, %v420_v43  ;;  %v523_v28 = vmul.f32 %v516_v15, %v419_v51 }
 0x363   :  { %v532_v8 = vsel %vm486_vm4, %v518_v19, 0.0  ;;  %v529_v33 = vsel %vm486_vm4, %v517_v20, 0.0  ;;  %v538_v39 = vsel %vm486_vm4, %v520_v23, 0.0  ;;  %v535_v58 = vsel %vm486_vm4, %v519_v22, 0.0  ;;  %v424_v20 = vld [vmem:[%s1487_s8 + $0x58] sm:$0xff]  ;;  %s1091_s8 = smov [#allocation3]  }
 0x364   :  { %533 = vadd.xlane.f32.xlu0 %v532_v8  ;;  %530 = vadd.xlane.f32.xlu1 %v529_v33  ;;  %v544_v61 = vsel %vm486_vm4, %v522_v34, 0.0  ;;  %v541_v63 = vsel %vm486_vm4, %v521_v37, 0.0  ;;  %v550_v3 = vsel %vm486_vm4, %v524_v24, 0.0  ;;  %v547_v12 = vsel %vm486_vm4, %v523_v28, 0.0  ;;  %s901_s13 = sshll.u32 %s1091_s8, 4  ;;  %s902_s13 = int_to_ptr.vmem [resolvable:$true] %s901_s13 }
 0x365   :  { %v526_v5 = vmul.f32 %v516_v15, %v422_v4  ;;  %v525_v19 = vmul.f32 %v516_v15, %v421_v10  ;;  %v750_v8 = vmax.f32 %v749_v2, 0.0  ;;  %v528_v22 = vmul.f32 %v516_v15, %v424_v20  ;;  %s1066_s6 = scalar_lea.vmem %s902_s13, 3072  ;;  %p1071_p1 = scmp.lt.s32.totalorder %s902_s13, %s902_s13 }
 0x366   :  { %v527_v38 = vmul.f32 %v516_v15, %v423_v7  ;;  %p1067_p0 = scmp.ne.s32.totalorder %s902_s13, %s1066_s6  ;;  %p1072_p2 = scmp.lt.s32.totalorder %s1066_s6, %s1066_s6 }
 0x367   :  { %v556_v33 = vsel %vm486_vm4, %v526_v5, 0.0  ;;  %v553_v23 = vsel %vm486_vm4, %v525_v19, 0.0  ;;  %v752_v34 = vmul.f32 %v750_v8, %v414_v6  ;;  %v751_v37 = vmul.f32 %v750_v8, %v413_v13 }
 0x368   :  { %539 = vadd.xlane.f32.xlu0 %v538_v39  ;;  %536 = vadd.xlane.f32.xlu1 %v535_v58  ;;  %v562_v39 = vsel %vm486_vm4, %v528_v22, 0.0  ;;  %v559_v58 = vsel %vm486_vm4, %v527_v38, 0.0  ;;  %v753_v24 = vmul.f32 %v750_v8, %v415_v21  ;;  %v756_v2 = vmul.f32 %v750_v8, %v418_v27  ;;  %p1073_p3 = por %p1072_p2, %p1071_p1 }
 0x369   :  { %v766_v60 = vsel %vm486_vm4, %v752_v34, 0.0  ;;  %v757_v5 = vmul.f32 %v750_v8, %v419_v51  ;;  %v760_v19 = vmul.f32 %v750_v8, %v422_v4  ;;  %v761_v22 = vmul.f32 %v750_v8, %v423_v7 }
 0x36a   :  { %v769_v28 = vsel %vm486_vm4, %v753_v24, 0.0  ;;  %v778_v6 = vsel %vm486_vm4, %v756_v2, 0.0  ;;  %p1074_p4 = pnand %p1073_p3, %p1067_p0 }
 0x36b   :  { %v781_v21 = vsel %vm486_vm4, %v757_v5, 0.0  ;;  %v790_v27 = vsel %vm486_vm4, %v760_v19, 0.0  ;;  %v793_v51 = vsel %vm486_vm4, %v761_v22, 0.0 }
 0x36c   :  { %545 = vadd.xlane.f32.xlu0 %v544_v61  ;;  %542 = vadd.xlane.f32.xlu1 %v541_v63  ;;  %v763_v61 = vsel %vm486_vm4, %v751_v37, 0.0  ;;  %v754_v63 = vmul.f32 %v750_v8, %v416_v18 }
 0x36e   :  { %v772_v15 = vsel %vm486_vm4, %v754_v63, 0.0 }
 0x370   :  { %551 = vadd.xlane.f32.xlu0 %v550_v3  ;;  %548 = vadd.xlane.f32.xlu1 %v547_v12  ;;  %v755_v3 = vmul.f32 %v750_v8, %v417_v9  ;;  %v758_v12 = vmul.f32 %v750_v8, %v420_v43 }
 0x372   :  { %v775_v13 = vsel %vm486_vm4, %v755_v3, 0.0  ;;  %v784_v18 = vsel %vm486_vm4, %v758_v12, 0.0 }
 0x374   :  { %557 = vadd.xlane.f32.xlu0 %v556_v33  ;;  %554 = vadd.xlane.f32.xlu1 %v553_v23  ;;  %v759_v33 = vmul.f32 %v750_v8, %v421_v10  ;;  %v762_v23 = vmul.f32 %v750_v8, %v424_v20 }
 0x376   :  { %v787_v9 = vsel %vm486_vm4, %v759_v33, 0.0  ;;  %v796_v43 = vsel %vm486_vm4, %v762_v23, 0.0 }
 0x378   :  { %563 = vadd.xlane.f32.xlu0 %v562_v39  ;;  %560 = vadd.xlane.f32.xlu1 %v559_v58 }
 0x37c   :  { %767 = vadd.xlane.f32.xlu0 %v766_v60  ;;  %764 = vadd.xlane.f32.xlu1 %v763_v61 }
 0x380   :  { %773 = vadd.xlane.f32.xlu0 %v772_v15  ;;  %770 = vadd.xlane.f32.xlu1 %v769_v28 }
 0x384   :  { %779 = vadd.xlane.f32.xlu0 %v778_v6  ;;  %776 = vadd.xlane.f32.xlu1 %v775_v13 }
 0x388   :  { %785 = vadd.xlane.f32.xlu0 %v784_v18  ;;  %782 = vadd.xlane.f32.xlu1 %v781_v21 }
 0x38c   :  { %791 = vadd.xlane.f32.xlu0 %v790_v27  ;;  %788 = vadd.xlane.f32.xlu1 %v787_v9 }
 0x390   :  { %797 = vadd.xlane.f32.xlu0 %v796_v43  ;;  %794 = vadd.xlane.f32.xlu1 %v793_v51 }
 0x3f1   :  { %v534_v38 = vpop.xlane.xlu0 %533  ;;  %v531_v39 = vpop.xlane.xlu1 %530 }
 0x3f2   :  { %v927_v4 = vmul.f32 -1.442695, %v534_v38  ;;  %v926_v10 = vmul.f32 -1.442695, %v531_v39 }
 0x3f4   :  { %970 = vpow2.f32 %v927_v4 }
 0x3f5   :  { %972 = vpow2.f32 %v926_v10  ;;  %v540_v58 = vpop.xlane.xlu0 %539  ;;  %v537_v34 = vpop.xlane.xlu1 %536 }
 0x3f6   :  { %v929_v37 = vmul.f32 -1.442695, %v540_v58  ;;  %v928_v60 = vmul.f32 -1.442695, %v537_v34 }
 0x3f8   :  { %974 = vpow2.f32 %v929_v37 }
 0x3f9   :  { %976 = vpow2.f32 %v928_v60  ;;  %v546_v20 = vpop.xlane.xlu0 %545  ;;  %v543_v7 = vpop.xlane.xlu1 %542 }
 0x3fa   :  { %v931_v8 = vmul.f32 -1.442695, %v546_v20  ;;  %v930_v61 = vmul.f32 -1.442695, %v543_v7 }
 0x3fc   :  { %978 = vpow2.f32 %v931_v8 }
 0x3fd   :  { %980 = vpow2.f32 %v930_v61  ;;  %v552_v63 = vpop.xlane.xlu0 %551  ;;  %v549_v24 = vpop.xlane.xlu1 %548 }
 0x3fe   :  { %v971_v15 = vpop.eup %970  ;;  %v933_v28 = vmul.f32 -1.442695, %v552_v63  ;;  %v932_v6 = vmul.f32 -1.442695, %v549_v24 }
 0x3ff   :  { %v973_v2 = vpop.eup %972  ;;  %v602_v3 = vadd.f32 1.0, %v971_v15 }
 0x400   :  { %v601_v13 = vadd.f32 1.0, %v973_v2  ;;  %982 = vpow2.f32 %v933_v28 }
 0x401   :  { %984 = vrcp.f32 %v602_v3  ;;  %v558_v12 = vpop.xlane.xlu0 %557  ;;  %v555_v5 = vpop.xlane.xlu1 %554 }
 0x402   :  { %v975_v18 = vpop.eup %974  ;;  %986 = vrcp.f32 %v601_v13  ;;  %v935_v21 = vmul.f32 -1.442695, %v558_v12  ;;  %v934_v27 = vmul.f32 -1.442695, %v555_v5 }
 0x403   :  { %v977_v19 = vpop.eup %976  ;;  %v604_v33 = vadd.f32 1.0, %v975_v18  ;;  %988 = vpow2.f32 %v932_v6 }
 0x404   :  { %v603_v9 = vadd.f32 1.0, %v977_v19  ;;  %990 = vpow2.f32 %v935_v21 }
 0x405   :  { %992 = vrcp.f32 %v604_v33  ;;  %v564_v23 = vpop.xlane.xlu0 %563  ;;  %v561_v22 = vpop.xlane.xlu1 %560 }
 0x406   :  { %v979_v43 = vpop.eup %978  ;;  %994 = vrcp.f32 %v603_v9  ;;  %v937_v51 = vmul.f32 -1.442695, %v564_v23  ;;  %v936_v4 = vmul.f32 -1.442695, %v561_v22 }
 0x407   :  { %v981_v38 = vpop.eup %980  ;;  %v606_v39 = vadd.f32 1.0, %v979_v43  ;;  %996 = vpow2.f32 %v934_v27 }
 0x408   :  { %v605_v10 = vadd.f32 1.0, %v981_v38  ;;  %998 = vpow2.f32 %v937_v51 }
 0x409   :  { %1000 = vrcp.f32 %v606_v39  ;;  %v768_v58 = vpop.xlane.xlu0 %767  ;;  %v765_v34 = vpop.xlane.xlu1 %764 }
 0x40a   :  { %v983_v37 = vpop.eup %982  ;;  %1002 = vrcp.f32 %v605_v10  ;;  %v939_v60 = vmul.f32 -1.442695, %v768_v58  ;;  %v938_v20 = vmul.f32 -1.442695, %v765_v34 }
 0x40b   :  { %v985_v7 = vpop.eup %984  ;;  %v608_v8 = vadd.f32 1.0, %v983_v37  ;;  %1004 = vpow2.f32 %v936_v4 }
 0x40c   :  { %v987_v61 = vpop.eup %986  ;;  %v638_v63 = vmul.f32 %v985_v7, %v1199_v30  ;;  %1006 = vpow2.f32 %v939_v60 }
 0x40d   :  { %v989_v24 = vpop.eup %988  ;;  %v637_v15 = vmul.f32 %v987_v61, %v1197_v25  ;;  %1008 = vrcp.f32 %v608_v8  ;;  %v774_v28 = vpop.xlane.xlu0 %773 }
 0x40e   :  { %v771_v2 = vpop.xlane.xlu1 %770  ;;  %v991_v3 = vpop.eup %990  ;;  %650 = vst [vmem:[#allocation3 + $0x8] sm:$0xff] %v638_v63  ;;  %v607_v6 = vadd.f32 1.0, %v989_v24  ;;  %1010 = vpow2.f32 %v938_v20  ;;  %v941_v13 = vmul.f32 -1.442695, %v774_v28 }
 0x40f   :  { %v993_v12 = vpop.eup %992  ;;  %649 = vst [vmem:[#allocation3] sm:$0xff] %v637_v15  ;;  %v610_v5 = vadd.f32 1.0, %v991_v3  ;;  %v940_v18 = vmul.f32 -1.442695, %v771_v2 }
 0x410   :  { %v995_v21 = vpop.eup %994  ;;  %v640_v19 = vmul.f32 %v993_v12, %v1214_v45  ;;  %1012 = vrcp.f32 %v607_v6 }
 0x411   :  { %v997_v30 = vpop.eup %996  ;;  %v639_v33 = vmul.f32 %v995_v21, %v1212_v41  ;;  %1014 = vrcp.f32 %v610_v5  ;;  %v780_v25 = vpop.xlane.xlu0 %779 }
 0x412   :  { %v777_v27 = vpop.xlane.xlu1 %776  ;;  %v999_v9 = vpop.eup %998  ;;  %652 = vst [vmem:[#allocation3 + $0x18] sm:$0xff] %v640_v19  ;;  %v609_v23 = vadd.f32 1.0, %v997_v30  ;;  %1016 = vpow2.f32 %v941_v13  ;;  %v943_v22 = vmul.f32 -1.442695, %v780_v25 }
 0x413   :  { %v1001_v43 = vpop.eup %1000  ;;  %651 = vst [vmem:[#allocation3 + $0x10] sm:$0xff] %v639_v33  ;;  %v612_v51 = vadd.f32 1.0, %v999_v9  ;;  %1018 = vpow2.f32 %v940_v18  ;;  %v942_v38 = vmul.f32 -1.442695, %v777_v27 }
 0x414   :  { %v1003_v39 = vpop.eup %1002  ;;  %v642_v45 = vmul.f32 %v1001_v43, %v1241_v0  ;;  %1020 = vrcp.f32 %v609_v23 }
 0x415   :  { %v1005_v4 = vpop.eup %1004  ;;  %v641_v41 = vmul.f32 %v1003_v39, %v1237_v59  ;;  %1022 = vrcp.f32 %v612_v51  ;;  %v786_v10 = vpop.xlane.xlu0 %785 }
 0x416   :  { %v783_v58 = vpop.xlane.xlu1 %782  ;;  %v1007_v34 = vpop.eup %1006  ;;  %654 = vst [vmem:[#allocation3 + $0x28] sm:$0xff] %v642_v45  ;;  %v611_v37 = vadd.f32 1.0, %v1005_v4  ;;  %1024 = vpow2.f32 %v943_v22  ;;  %v945_v60 = vmul.f32 -1.442695, %v786_v10 }
 0x417   :  { %v1009_v20 = vpop.eup %1008  ;;  %653 = vst [vmem:[#allocation3 + $0x20] sm:$0xff] %v641_v41  ;;  %v836_v7 = vadd.f32 1.0, %v1007_v34  ;;  %1026 = vpow2.f32 %v942_v38  ;;  %v944_v0 = vmul.f32 -1.442695, %v783_v58 }
 0x418   :  { %v1011_v8 = vpop.eup %1010  ;;  %v644_v61 = vmul.f32 %v1009_v20, %v1257_v16  ;;  %1028 = vrcp.f32 %v611_v37 }
 0x419   :  { %1030 = vrcp.f32 %v836_v7  ;;  %v835_v63 = vadd.f32 1.0, %v1011_v8  ;;  %v792_v59 = vpop.xlane.xlu0 %791 }
 0x41a   :  { %v789_v24 = vpop.xlane.xlu1 %788  ;;  %v1013_v15 = vpop.eup %1012  ;;  %656 = vst [vmem:[#allocation3 + $0x38] sm:$0xff] %v644_v61  ;;  %1032 = vpow2.f32 %v945_v60  ;;  %v947_v28 = vmul.f32 -1.442695, %v792_v59 }
 0x41b   :  { %v946_v2 = vmul.f32 -1.442695, %v789_v24  ;;  %v1015_v3 = vpop.eup %1014  ;;  %v643_v6 = vmul.f32 %v1013_v15, %v1253_v11  ;;  %1034 = vrcp.f32 %v835_v63 }
 0x41c   :  { %v1017_v13 = vpop.eup %1016  ;;  %v646_v12 = vmul.f32 %v1015_v3, %v371_v52  ;;  %1036 = vpow2.f32 %v944_v0 }
 0x41d   :  { %v1019_v16 = vpop.eup %1018  ;;  %655 = vst [vmem:[#allocation3 + $0x30] sm:$0xff] %v643_v6  ;;  %v838_v5 = vadd.f32 1.0, %v1017_v13  ;;  %1038 = vpow2.f32 %v947_v28  ;;  %v798_v18 = vpop.xlane.xlu0 %797 }
 0x41e   :  { %v795_v21 = vpop.xlane.xlu1 %794  ;;  %v1021_v19 = vpop.eup %1020  ;;  %658 = vst [vmem:[#allocation3 + $0x48] sm:$0xff] %v646_v12  ;;  %v837_v30 = vadd.f32 1.0, %v1019_v16  ;;  %1040 = vpow2.f32 %v946_v2  ;;  %v949_v33 = vmul.f32 -1.442695, %v798_v18 }
 0x41f   :  { %v948_v25 = vmul.f32 -1.442695, %v795_v21  ;;  %v1023_v27 = vpop.eup %1022  ;;  %v645_v11 = vmul.f32 %v1021_v19, %v369_v35  ;;  %1042 = vrcp.f32 %v838_v5 }
 0x420   :  { %v1025_v48 = vpop.eup %1024  ;;  %v648_v52 = vmul.f32 %v1023_v27, %v375_v56  ;;  %1044 = vrcp.f32 %v837_v30 }
 0x421   :  { %v1027_v9 = vpop.eup %1026  ;;  %657 = vst [vmem:[#allocation3 + $0x40] sm:$0xff] %v645_v11  ;;  %v840_v23 = vadd.f32 1.0, %v1025_v48  ;;  %1046 = vpow2.f32 %v949_v33 }
 0x422   :  { %v1029_v22 = vpop.eup %1028  ;;  %660 = vst [vmem:[#allocation3 + $0x58] sm:$0xff] %v648_v52  ;;  %v839_v43 = vadd.f32 1.0, %v1027_v9  ;;  %1048 = vpow2.f32 %v948_v25 }
 0x423   :  { %v1031_v51 = vpop.eup %1030  ;;  %v647_v38 = vmul.f32 %v1029_v22, %v373_v44  ;;  %1050 = vrcp.f32 %v840_v23 }
 0x424   :  { %v1033_v26 = vpop.eup %1032  ;;  %v872_v35 = vmul.f32 %v1031_v51, %v1204_v32  ;;  %1052 = vrcp.f32 %v839_v43 }
 0x425   :  { %v1035_v53 = vpop.eup %1034  ;;  %659 = vst [vmem:[#allocation3 + $0x50] sm:$0xff] %v647_v38  ;;  %v842_v56 = vadd.f32 1.0, %v1033_v26 }
 0x426   :  { %v1037_v39 = vpop.eup %1036  ;;  %885 = vst [vmem:[#allocation3 + $0x68] sm:$0xff] %v872_v35  ;;  %v871_v45 = vmul.f32 %v1035_v53, %v1202_v31 }
 0x427   :  { %v1039_v4 = vpop.eup %1038  ;;  %1054 = vrcp.f32 %v842_v56  ;;  %v841_v41 = vadd.f32 1.0, %v1037_v39 }
 0x428   :  { %v1041_v10 = vpop.eup %1040  ;;  %884 = vst [vmem:[#allocation3 + $0x60] sm:$0xff] %v871_v45  ;;  %v844_v58 = vadd.f32 1.0, %v1039_v4 }
 0x429   :  { %v1043_v36 = vpop.eup %1042  ;;  %1056 = vrcp.f32 %v841_v41  ;;  %v843_v44 = vadd.f32 1.0, %v1041_v10 }
 0x42a   :  { %v1045_v34 = vpop.eup %1044  ;;  %v874_v32 = vmul.f32 %v1043_v36, %v1220_v47  ;;  %1058 = vrcp.f32 %v844_v58 }
 0x42b   :  { %v1047_v37 = vpop.eup %1046  ;;  %v873_v60 = vmul.f32 %v1045_v34, %v1218_v46  ;;  %1060 = vrcp.f32 %v843_v44 }
 0x42c   :  { %v1049_v20 = vpop.eup %1048  ;;  %887 = vst [vmem:[#allocation3 + $0x78] sm:$0xff] %v874_v32  ;;  %v846_v31 = vadd.f32 1.0, %v1047_v37 }
 0x42d   :  { %v1051_v7 = vpop.eup %1050  ;;  %886 = vst [vmem:[#allocation3 + $0x70] sm:$0xff] %v873_v60  ;;  %v845_v8 = vadd.f32 1.0, %v1049_v20 }
 0x42e   :  { %v1053_v61 = vpop.eup %1052  ;;  %v876_v0 = vmul.f32 %v1051_v7, %v1244_v1  ;;  %1062 = vrcp.f32 %v846_v31 }
 0x42f   :  { %v875_v63 = vmul.f32 %v1053_v61, %v1239_v62  ;;  %1064 = vrcp.f32 %v845_v8 }
 0x430   :  { %889 = vst [vmem:[#allocation3 + $0x88] sm:$0xff] %v876_v0 }
 0x431   :  { %v1055_v47 = vpop.eup %1054  ;;  %888 = vst [vmem:[#allocation3 + $0x80] sm:$0xff] %v875_v63 }
 0x432   :  { %v878_v59 = vmul.f32 %v1055_v47, %v1260_v17 }
 0x433   :  { %v1057_v46 = vpop.eup %1056 }
 0x434   :  { %v1059_v24 = vpop.eup %1058  ;;  %891 = vst [vmem:[#allocation3 + $0x98] sm:$0xff] %v878_v59  ;;  %v877_v15 = vmul.f32 %v1057_v46, %v1255_v14 }
 0x435   :  { %v1061_v28 = vpop.eup %1060  ;;  %v880_v2 = vmul.f32 %v1059_v24, %v372_v54 }
 0x436   :  { %890 = vst [vmem:[#allocation3 + $0x90] sm:$0xff] %v877_v15  ;;  %v879_v1 = vmul.f32 %v1061_v28, %v370_v40 }
 0x437   :  { %893 = vst [vmem:[#allocation3 + $0xa8] sm:$0xff] %v880_v2 }
 0x438   :  { %v1063_v62 = vpop.eup %1062  ;;  %892 = vst [vmem:[#allocation3 + $0xa0] sm:$0xff] %v879_v1 }
 0x439   :  { %v1065_v3 = vpop.eup %1064  ;;  %v882_v17 = vmul.f32 %v1063_v62, %v376_v57 }
 0x43a   :  { %v881_v14 = vmul.f32 %v1065_v3, %v374_v49 }
 0x43b   :  { %895 = vst [vmem:[#allocation3 + $0xb8] sm:$0xff] %v882_v17 }
 0x43c   :  { %894 = vst [vmem:[#allocation3 + $0xb0] sm:$0xff] %v881_v14 }
 0x43d   :  { %1077 = shalt.err (!%p1074_p4)
}
 0x43e   :  { %s1078_s15 = scalar_lea.hbm %s1488_s9, 3072 }
 0x43f   :  { %p1079_p5 = scmp.ne.s32.totalorder %s1488_s9, %s1078_s15  ;;  %p1082_p6 = scmp.lt.u32.totalorder %s1078_s15, %s1488_s9 }
 0x441   :  { %p1084_p7 = pnand %p1082_p6, %p1079_p5 }
 0x443   :  { %1087 = shalt.err (!%p1084_p7)
}
 0x444   :  { %s1092_s18 = smov 128   ;;  %s1093_s5 = smov 8  }
 0x445   :  { %907 = dma.vmem_to_hbm [thread:$0]  %s902_s13, 3072, %s1488_s9, [#allocation4], %s1092_s18, %s1092_s18, %s1093_s5  }
 0x446   :  { %1088 = dma.done.wait [#allocation4], 3072  }
 0x447   :  { %1089 = vsyncadd [#allocation4], 4294964224 }
 0x448   :  { %911 = vsyncpa [#allocation4], 1 }

</bundles_post_ra>
